<compile_context>
chip_gen: v7x
topology: tpu7x:2x2x1
jax: 0.10.0
libtpu: 0.0.40
codegen_flags: <defaults>
</compile_context>

<pallas_src>
import functools

import jax
import jax.numpy as jnp
from jax.experimental import pallas as pl
from jax.experimental.pallas import tpu as pltpu

EPS = 1e-5  # nn.BatchNorm3d default eps


def _compiler_params(**kwargs):
    cls = getattr(pltpu, "CompilerParams", None)
    if cls is None:  # very old nightlies used a different name
        cls = getattr(pltpu, "TPUCompilerParams")
    return cls(**kwargs)


def _pick_tile_n(n, c, itemsize, target_bytes=2 << 20):
    """Lane tile: largest multiple of 128 whose (C, tile) buffer <= target_bytes.

    Prefers a tile that divides N exactly (no padding) when N is 128-aligned;
    otherwise the caller zero-pads N up to a multiple of the returned tile.
    ~2 MiB per buffer keeps both passes (double-buffered inputs + outputs +
    per-batch (C,C) weights) comfortably under the scoped-VMEM defaults of all
    generations (16 MiB v5e, 32 MiB v6e/v7x) while being large enough to
    amortize the ~0.35 us per-grid-step overhead.
    """
    budget_lanes = max(int(target_bytes) // max(c * itemsize, 1), 128)
    budget_128 = max(budget_lanes // 128, 1)   # budget in 128-lane units
    n_128 = -(-n // 128)                       # ceil(n / 128)
    if n % 128 == 0:
        # Largest divisor of n/128 within budget -> tile divides N, no padding.
        for d in range(min(budget_128, n_128), 0, -1):
            if n_128 % d == 0:
                return d * 128
        return 128
    return min(budget_128, n_128) * 128


# ---------------------------------------------------------------------------
# Pass 1: per-batch Gram matrix G_b = x_b @ x_b^T, row-sums and row-sums-of-
# squares.  grid = (B, N_SPLIT, N_tiles); B and the N-split axes are
# "parallel" (megacore), the N reduction axis is last and "arbitrary".  The
# G/s/ss outputs have index_maps constant in the reduction axis, so they stay
# VMEM-resident accumulators (initialized via pl.when at tile 0).
# sum / sum-of-squares are always computed in f32 on the VPU/XLU (overlaps the
# MXU) so BatchNorm statistics never depend on bf16 Gram operands.
# ---------------------------------------------------------------------------
def _gram_kernel(x_ref, g_ref, s_ref, ss_ref, *, bf16_mxu):
    j = pl.program_id(2)

    @pl.when(j == 0)
    def _init():
        g_ref[...] = jnp.zeros_like(g_ref)
        s_ref[...] = jnp.zeros_like(s_ref)
        ss_ref[...] = jnp.zeros_like(ss_ref)

    x32 = x_ref[0].astype(jnp.float32)                        # (C, TILE_N)
    xd = x_ref[0].astype(jnp.bfloat16) if bf16_mxu else x32   # MXU operand
    # Contraction over the lane (N) axis of both operands.
    g_ref[0, 0] += jax.lax.dot_general(
        xd, xd, dimension_numbers=(((1,), (1,)), ((), ())),
        preferred_element_type=jnp.float32)                   # (C, C)
    s_ref[0, 0] += jnp.sum(x32, axis=1, keepdims=True)        # (C, 1)
    ss_ref[0, 0] += jnp.sum(x32 * x32, axis=1, keepdims=True)  # (C, 1)


# ---------------------------------------------------------------------------
# Pass 2: out_tile = M_b @ x_tile + c_b  (residual already folded into M_b on
# the f32 path; bf16 path keeps an explicit f32 residual add).  Lane-dense
# (C, TILE_N) blocks; per-batch weights (M_b, c_b) have index_maps constant
# along N so they are DMA'd once per batch and stay VMEM-resident.
# M_b is pre-cast to bf16 in the glue when bf16_mxu (no per-step cast).
# ---------------------------------------------------------------------------
def _output_kernel(x_ref, m_ref, c_ref, o_ref, *, bf16_mxu):
    m = m_ref[0]                                              # (C, C)
    if bf16_mxu:
        y = jnp.dot(m, x_ref[0].astype(jnp.bfloat16),
                    preferred_element_type=jnp.float32)
        y = y + c_ref[0] + x_ref[0].astype(jnp.float32)       # residual in f32
    else:
        # Residual folded into m (identity added in the glue).
        y = jnp.dot(m, x_ref[0].astype(jnp.float32),
                    preferred_element_type=jnp.float32) + c_ref[0]
    o_ref[0] = y.astype(o_ref.dtype)


@jax.jit
def attn_block(x_ncdhw, params):
    b, c, h, w, d = x_ncdhw.shape
    n = h * w * d
    f32 = jnp.float32
    x = x_ncdhw.reshape(b, c, n)          # keep input dtype; kernels upcast per tile

    itemsize = jnp.dtype(x.dtype).itemsize
    tn = _pick_tile_n(n, c, itemsize)
    n_pad = -(-n // tn) * tn
    if n_pad != n:
        # Zero padding contributes nothing to G / s / ss; padded output
        # columns are sliced off after pass 2.
        x = jnp.pad(x, ((0, 0), (0, 0), (0, n_pad - n)))
    tiles = n_pad // tn

    # Megacore: with B == 1, split the N reduction over a second parallel axis
    # so both TensorCores (v7x) get work; partials are summed in the glue.
    n_split = 2 if (b == 1 and tiles >= 2 and tiles % 2 == 0) else 1
    tps = tiles // n_split

    bf16_mxu = bool(c >= 128 or x.dtype == jnp.bfloat16)

    # ---- Pass 1: Gram + row-sums + row-sum-of-squares (single read of x) ---
    gram_p, rowsum_p, sumsq_p = pl.pallas_call(
        functools.partial(_gram_kernel, bf16_mxu=bf16_mxu),
        grid=(b, n_split, tps),
        in_specs=[pl.BlockSpec((1, c, tn),
                               lambda bi, si, j: (bi, 0, si * tps + j))],
        out_specs=(pl.BlockSpec((1, 1, c, c), lambda bi, si, j: (bi, si, 0, 0)),
                   pl.BlockSpec((1, 1, c, 1), lambda bi, si, j: (bi, si, 0, 0)),
                   pl.BlockSpec((1, 1, c, 1), lambda bi, si, j: (bi, si, 0, 0))),
        out_shape=(jax.ShapeDtypeStruct((b, n_split, c, c), f32),
                   jax.ShapeDtypeStruct((b, n_split, c, 1), f32),
                   jax.ShapeDtypeStruct((b, n_split, c, 1), f32)),
        compiler_params=_compiler_params(
            dimension_semantics=("parallel", "parallel", "arbitrary")),
    )(x)

    gram = jnp.sum(gram_p, axis=1)                 # (B, C, C)
    rowsum = jnp.sum(rowsum_p, axis=1)             # (B, C, 1)
    sumsq = jnp.sum(sumsq_p, axis=1)[:, :, 0]      # (B, C)

    # ---- Tiny O(B*C^2) glue in plain XLA -----------------------------------
    gamma = params['gamma'].astype(f32)
    beta = params['beta'].astype(f32)
    wq, bq = params['wq'].astype(f32), params['bq'].astype(f32)
    wk, bk = params['wk'].astype(f32), params['bk'].astype(f32)
    wv, bv = params['wv'].astype(f32), params['bv'].astype(f32)
    wp, bp = params['wp'].astype(f32), params['bp'].astype(f32)

    # One-pass BatchNorm3d batch statistics (biased variance, clamped >= 0),
    # computed from the dedicated f32 sum / sum-of-squares accumulators.
    count = float(b * n)
    ch_sum = jnp.sum(rowsum[:, :, 0], axis=0)      # (C,)
    ch_sumsq = jnp.sum(sumsq, axis=0)              # (C,)
    mean = ch_sum / count
    var = jnp.maximum(ch_sumsq / count - mean * mean, 0.0)
    s_bn = gamma * jax.lax.rsqrt(var + EPS)        # per-channel scale
    t_bn = beta - mean * s_bn                      # per-channel shift

    # Fold BN affine into the 1x1x1 convs; fold the attention scale into q.
    scale = c ** -0.5
    wq_e = (wq * scale) * s_bn[None, :]
    bq_e = bq * scale + (wq * scale) @ t_bn
    wk_e = wk * s_bn[None, :]
    bk_e = bk + wk @ t_bn
    wv_e = wv * s_bn[None, :]
    bv_e = bv + wv @ t_bn

    # Attention logits from the Gram decomposition:
    #   q k^T = Wq' G Wk'^T + (Wq' s) bk'^T + bq' (Wk' s)^T + N bq' bk'^T
    sb = rowsum[:, :, 0]                                              # (B, C)
    logits = (jnp.einsum('oc,bcd,pd->bop', wq_e, gram, wk_e)
              + jnp.einsum('bo,p->bop', sb @ wq_e.T, bk_e)
              + jnp.einsum('o,bp->bop', bq_e, sb @ wk_e.T)
              + float(n) * jnp.outer(bq_e, bk_e)[None, :, :])
    attn = jax.nn.softmax(logits, axis=-1)                            # (B, C, C)

    # Collapse attn@v followed by proj_out into one per-batch matrix + bias.
    m_eff = jnp.einsum('oc,bcd,de->boe', wp, attn, wv_e)              # (B, C, C)
    c_eff = jnp.einsum('oc,bcd,d->bo', wp, attn, bv_e) + bp[None, :]  # (B, C)

    if bf16_mxu:
        # Hoisted cast: half the DMA / VMEM for the per-batch weight matrix.
        m_pass = m_eff.astype(jnp.bfloat16)
    else:
        # Fold the residual: out = (I + M) x + c, no explicit add in-kernel.
        m_pass = m_eff + jnp.eye(c, dtype=f32)[None, :, :]

    # ---- Pass 2: out = M'_b x + c_b (+x)  (one read + one write of x) ------
    out = pl.pallas_call(
        functools.partial(_output_kernel, bf16_mxu=bf16_mxu),
        grid=(b, tiles),
        in_specs=[pl.BlockSpec((1, c, tn), lambda bi, j: (bi, 0, j)),
                  pl.BlockSpec((1, c, c), lambda bi, j: (bi, 0, 0)),
                  pl.BlockSpec((1, c, 1), lambda bi, j: (bi, 0, 0))],
        out_specs=pl.BlockSpec((1, c, tn), lambda bi, j: (bi, 0, j)),
        out_shape=jax.ShapeDtypeStruct((b, c, n_pad), x.dtype),
        compiler_params=_compiler_params(
            dimension_semantics=("parallel", "parallel")),
    )(x, m_pass, c_eff.reshape(b, c, 1))

    if n_pad != n:
        out = out[:, :, :n]
    return out.reshape(b, c, h, w, d)


def attn_block_reference(x, params):
    """Pure-JAX reference mirroring the PyTorch forward (training-mode BN)."""
    b, c, h, w, d = x.shape
    mean = x.mean(axis=(0, 2, 3, 4), keepdims=True)
    var = ((x - mean) ** 2).mean(axis=(0, 2, 3, 4), keepdims=True)
    xn = (x - mean) / jnp.sqrt(var + EPS)
    xn = xn * params['gamma'].reshape(1, c, 1, 1, 1) + params['beta'].reshape(1, c, 1, 1, 1)

    def conv(wname, bname, inp):
        return (jnp.einsum('oc,bcxyz->boxyz', params[wname], inp)
                + params[bname].reshape(1, c, 1, 1, 1))

    q = conv('wq', 'bq', xn).reshape(b, c, -1)
    k = conv('wk', 'bk', xn).reshape(b, c, -1)
    v = conv('wv', 'bv', xn).reshape(b, c, -1)
    attn = jnp.einsum('bcn,bdn->bcd', q, k) * (c ** -0.5)
    attn = jax.nn.softmax(attn, axis=-1)
    out = jnp.einsum('bcd,bdn->bcn', attn, v).reshape(b, c, h, w, d)
    out = conv('wp', 'bp', out)
    return x + out


def init_params(key, channels):
    ks = jax.random.split(key, 10)
    c = channels
    return {
        'gamma': 1.0 + 0.1 * jax.random.normal(ks[0], (c,), jnp.float32),
        'beta': 0.1 * jax.random.normal(ks[1], (c,), jnp.float32),
        'wq': 0.3 * jax.random.normal(ks[2], (c, c), jnp.float32),
        'bq': 0.1 * jax.random.normal(ks[3], (c,), jnp.float32),
        'wk': 0.3 * jax.random.normal(ks[4], (c, c), jnp.float32),
        'bk': 0.1 * jax.random.normal(ks[5], (c,), jnp.float32),
        'wv': 0.3 * jax.random.normal(ks[6], (c, c), jnp.float32),
        'bv': 0.1 * jax.random.normal(ks[7], (c,), jnp.float32),
        'wp': 0.3 * jax.random.normal(ks[8], (c, c), jnp.float32),
        'bp': 0.1 * jax.random.normal(ks[9], (c,), jnp.float32),
    }


if __name__ == "__main__":
    B, C, H, W, D = 2, 4, 8, 8, 16      # N = H*W*D = 1024 -> single 1024-lane tile
    key = jax.random.PRNGKey(0)
    k_x, k_p = jax.random.split(key)
    x = jax.random.normal(k_x, (B, C, H, W, D), jnp.float32)
    params = init_params(k_p, C)

    out = jax.block_until_ready(attn_block(x, params))
    ref = attn_block_reference(x, params)

    assert out.shape == (B, C, H, W, D)
    max_err = jnp.max(jnp.abs(out - ref))
    assert jnp.allclose(out, ref, rtol=2e-3, atol=2e-3), \
        f"max abs err = {max_err}"

    print("KERNEL_OK")
</pallas_src>

<mosaic_0001>
module attributes {stable_mosaic.version = 11 : i64} {
  func.func @_gram_kernel(%arg0: i32, %arg1: i32, %arg2: i32, %arg3: memref<1x4x1024xf32, #tpu.memory_space<vmem>>, %arg4: memref<1x1x4x4xf32, #tpu.memory_space<vmem>>, %arg5: memref<1x1x4x1xf32, #tpu.memory_space<vmem>>, %arg6: memref<1x1x4x1xf32, #tpu.memory_space<vmem>>) attributes {dimension_semantics = [#tpu.dimension_semantics<parallel>, #tpu.dimension_semantics<parallel>, #tpu.dimension_semantics<arbitrary>], iteration_bounds = array<i64: 2, 1, 1>, scalar_prefetch = 0 : i64, scratch_operands = 0 : i64, tpu.core_type = #tpu.core_type<tc>, window_params = [{transform_indices = @transform_0, window_bounds = array<i64: 1, 4, 1024>}, {transform_indices = @transform_1, window_bounds = array<i64: 1, 1, 4, 4>}, {transform_indices = @transform_2, window_bounds = array<i64: 1, 1, 4, 1>}, {transform_indices = @transform_3, window_bounds = array<i64: 1, 1, 4, 1>}]} {
    %c0_i32 = arith.constant 0 : i32
    %0 = arith.cmpi eq, %arg2, %c0_i32 : i32
    %1 = arith.extui %0 : i1 to i32
    %c0_i32_0 = arith.constant 0 : i32
    %2 = arith.cmpi ne, %1, %c0_i32_0 : i32
    scf.if %2 {
      %cst_29 = arith.constant 0.000000e+00 : f32
      %29 = vector.broadcast %cst_29 : f32 to vector<1x1x4x4xf32>
      %c0_30 = arith.constant 0 : index
      %c0_31 = arith.constant 0 : index
      %c0_32 = arith.constant 0 : index
      %c0_33 = arith.constant 0 : index
      %30 = vector.load %arg4[%c0_30, %c0_31, %c0_32, %c0_33] : memref<1x1x4x4xf32, #tpu.memory_space<vmem>>, vector<1x1x4x4xf32>
      tpu.vector_store %arg4[%c0_30, %c0_31, %c0_32, %c0_33], %29 {strides = array<i32>} : memref<1x1x4x4xf32, #tpu.memory_space<vmem>>, vector<1x1x4x4xf32>,
      %cst_34 = arith.constant 0.000000e+00 : f32
      %31 = vector.broadcast %cst_34 : f32 to vector<1x1x4x1xf32>
      %c0_35 = arith.constant 0 : index
      %c0_36 = arith.constant 0 : index
      %c0_37 = arith.constant 0 : index
      %c0_38 = arith.constant 0 : index
      %32 = vector.load %arg5[%c0_35, %c0_36, %c0_37, %c0_38] : memref<1x1x4x1xf32, #tpu.memory_space<vmem>>, vector<1x1x4x1xf32>
      tpu.vector_store %arg5[%c0_35, %c0_36, %c0_37, %c0_38], %31 {strides = array<i32>} : memref<1x1x4x1xf32, #tpu.memory_space<vmem>>, vector<1x1x4x1xf32>,
      %cst_39 = arith.constant 0.000000e+00 : f32
      %33 = vector.broadcast %cst_39 : f32 to vector<1x1x4x1xf32>
      %c0_40 = arith.constant 0 : index
      %c0_41 = arith.constant 0 : index
      %c0_42 = arith.constant 0 : index
      %c0_43 = arith.constant 0 : index
      %34 = vector.load %arg6[%c0_40, %c0_41, %c0_42, %c0_43] : memref<1x1x4x1xf32, #tpu.memory_space<vmem>>, vector<1x1x4x1xf32>
      tpu.vector_store %arg6[%c0_40, %c0_41, %c0_42, %c0_43], %33 {strides = array<i32>} : memref<1x1x4x1xf32, #tpu.memory_space<vmem>>, vector<1x1x4x1xf32>,
    } else {
    }
    %c0 = arith.constant 0 : index
    %c0_1 = arith.constant 0 : index
    %c0_2 = arith.constant 0 : index
    %3 = vector.load %arg3[%c0, %c0_1, %c0_2] : memref<1x4x1024xf32, #tpu.memory_space<vmem>>, vector<1x4x1024xf32>
    %4 = vector.shape_cast %3 : vector<1x4x1024xf32> to vector<4x1024xf32>
    %c0_3 = arith.constant 0 : index
    %c0_4 = arith.constant 0 : index
    %c0_5 = arith.constant 0 : index
    %c0_6 = arith.constant 0 : index
    %5 = vector.load %arg4[%c0_3, %c0_4, %c0_5, %c0_6] : memref<1x1x4x4xf32, #tpu.memory_space<vmem>>, vector<1x1x4x4xf32>
    %6 = vector.shape_cast %5 : vector<1x1x4x4xf32> to vector<4x4xf32>
    %cst = arith.constant dense<0.000000e+00> : vector<4x4xf32>
    %7 = tpu.matmul %4, %4, %cst {dimension_numbers = #tpu.dot_dimension_numbers<[1], [1], [0], [0], [0, 0, 1, 0], [], []>} : vector<4x1024xf32>, vector<4x1024xf32>, vector<4x4xf32> -> vector<4x4xf32>
    %8 = arith.addf %6, %7 : vector<4x4xf32>
    %c0_7 = arith.constant 0 : index
    %c0_8 = arith.constant 0 : index
    %c0_9 = arith.constant 0 : index
    %c0_10 = arith.constant 0 : index
    %9 = vector.load %arg4[%c0_7, %c0_8, %c0_9, %c0_10] : memref<1x1x4x4xf32, #tpu.memory_space<vmem>>, vector<1x1x4x4xf32>
    %10 = vector.shape_cast %9 : vector<1x1x4x4xf32> to vector<4x4xf32>
    %11 = vector.shape_cast %8 : vector<4x4xf32> to vector<1x1x4x4xf32>
    tpu.vector_store %arg4[%c0_7, %c0_8, %c0_9, %c0_10], %11 {strides = array<i32>} : memref<1x1x4x4xf32, #tpu.memory_space<vmem>>, vector<1x1x4x4xf32>,
    %c0_11 = arith.constant 0 : index
    %c0_12 = arith.constant 0 : index
    %c0_13 = arith.constant 0 : index
    %c0_14 = arith.constant 0 : index
    %12 = vector.load %arg5[%c0_11, %c0_12, %c0_13, %c0_14] : memref<1x1x4x1xf32, #tpu.memory_space<vmem>>, vector<1x1x4x1xf32>
    %13 = vector.shape_cast %12 : vector<1x1x4x1xf32> to vector<4x1xf32>
    %cst_15 = arith.constant dense<0.000000e+00> : vector<4xf32>
    %14 = vector.multi_reduction <add>, %4, %cst_15 [1] : vector<4x1024xf32> to vector<4xf32>
    %15 = vector.shape_cast %14 : vector<4xf32> to vector<4x1xf32>
    %16 = arith.addf %13, %15 : vector<4x1xf32>
    %c0_16 = arith.constant 0 : index
    %c0_17 = arith.constant 0 : index
    %c0_18 = arith.constant 0 : index
    %c0_19 = arith.constant 0 : index
    %17 = vector.load %arg5[%c0_16, %c0_17, %c0_18, %c0_19] : memref<1x1x4x1xf32, #tpu.memory_space<vmem>>, vector<1x1x4x1xf32>
    %18 = vector.shape_cast %17 : vector<1x1x4x1xf32> to vector<4x1xf32>
    %19 = vector.shape_cast %16 : vector<4x1xf32> to vector<1x1x4x1xf32>
    tpu.vector_store %arg5[%c0_16, %c0_17, %c0_18, %c0_19], %19 {strides = array<i32>} : memref<1x1x4x1xf32, #tpu.memory_space<vmem>>, vector<1x1x4x1xf32>,
    %c0_20 = arith.constant 0 : index
    %c0_21 = arith.constant 0 : index
    %c0_22 = arith.constant 0 : index
    %c0_23 = arith.constant 0 : index
    %20 = vector.load %arg6[%c0_20, %c0_21, %c0_22, %c0_23] : memref<1x1x4x1xf32, #tpu.memory_space<vmem>>, vector<1x1x4x1xf32>
    %21 = vector.shape_cast %20 : vector<1x1x4x1xf32> to vector<4x1xf32>
    %22 = arith.mulf %4, %4 : vector<4x1024xf32>
    %cst_24 = arith.constant dense<0.000000e+00> : vector<4xf32>
    %23 = vector.multi_reduction <add>, %22, %cst_24 [1] : vector<4x1024xf32> to vector<4xf32>
    %24 = vector.shape_cast %23 : vector<4xf32> to vector<4x1xf32>
    %25 = arith.addf %21, %24 : vector<4x1xf32>
    %c0_25 = arith.constant 0 : index
    %c0_26 = arith.constant 0 : index
    %c0_27 = arith.constant 0 : index
    %c0_28 = arith.constant 0 : index
    %26 = vector.load %arg6[%c0_25, %c0_26, %c0_27, %c0_28] : memref<1x1x4x1xf32, #tpu.memory_space<vmem>>, vector<1x1x4x1xf32>
    %27 = vector.shape_cast %26 : vector<1x1x4x1xf32> to vector<4x1xf32>
    %28 = vector.shape_cast %25 : vector<4x1xf32> to vector<1x1x4x1xf32>
    tpu.vector_store %arg6[%c0_25, %c0_26, %c0_27, %c0_28], %28 {strides = array<i32>} : memref<1x1x4x1xf32, #tpu.memory_space<vmem>>, vector<1x1x4x1xf32>,
    return
  }
  func.func @transform_0(%arg0: i32, %arg1: i32, %arg2: i32) -> (i32, i32, i32) {
    %c1_i32 = arith.constant 1 : i32
    %0 = arith.muli %arg1, %c1_i32 : i32
    %1 = arith.addi %0, %arg2 : i32
    %c0_i32 = arith.constant 0 : i32
    %c0_i32_0 = arith.constant 0 : i32
    return %arg0, %c0_i32, %1 : i32, i32, i32
  }
  func.func @transform_1(%arg0: i32, %arg1: i32, %arg2: i32) -> (i32, i32, i32, i32) {
    %c0_i32 = arith.constant 0 : i32
    %c0_i32_0 = arith.constant 0 : i32
    %c0_i32_1 = arith.constant 0 : i32
    return %arg0, %arg1, %c0_i32, %c0_i32_0 : i32, i32, i32, i32
  }
  func.func @transform_2(%arg0: i32, %arg1: i32, %arg2: i32) -> (i32, i32, i32, i32) {
    %c0_i32 = arith.constant 0 : i32
    %c0_i32_0 = arith.constant 0 : i32
    %c0_i32_1 = arith.constant 0 : i32
    return %arg0, %arg1, %c0_i32, %c0_i32_0 : i32, i32, i32, i32
  }
  func.func @transform_3(%arg0: i32, %arg1: i32, %arg2: i32) -> (i32, i32, i32, i32) {
    %c0_i32 = arith.constant 0 : i32
    %c0_i32_0 = arith.constant 0 : i32
    %c0_i32_1 = arith.constant 0 : i32
    return %arg0, %arg1, %c0_i32, %c0_i32_0 : i32, i32, i32, i32
  }
}

module attributes {stable_mosaic.version = 11 : i64} {
  func.func @_output_kernel(%arg0: i32, %arg1: i32, %arg2: memref<1x4x1024xf32, #tpu.memory_space<vmem>>, %arg3: memref<1x4x4xf32, #tpu.memory_space<vmem>>, %arg4: memref<1x4x1xf32, #tpu.memory_space<vmem>>, %arg5: memref<1x4x1024xf32, #tpu.memory_space<vmem>>) attributes {dimension_semantics = [#tpu.dimension_semantics<parallel>, #tpu.dimension_semantics<parallel>], iteration_bounds = array<i64: 2, 1>, scalar_prefetch = 0 : i64, scratch_operands = 0 : i64, tpu.core_type = #tpu.core_type<tc>, window_params = [{transform_indices = @transform_0, window_bounds = array<i64: 1, 4, 1024>}, {transform_indices = @transform_1, window_bounds = array<i64: 1, 4, 4>}, {transform_indices = @transform_2, window_bounds = array<i64: 1, 4, 1>}, {transform_indices = @transform_3, window_bounds = array<i64: 1, 4, 1024>}]} {
    %c0 = arith.constant 0 : index
    %c0_0 = arith.constant 0 : index
    %c0_1 = arith.constant 0 : index
    %0 = vector.load %arg3[%c0, %c0_0, %c0_1] : memref<1x4x4xf32, #tpu.memory_space<vmem>>, vector<1x4x4xf32>
    %1 = vector.shape_cast %0 : vector<1x4x4xf32> to vector<4x4xf32>
    %c0_2 = arith.constant 0 : index
    %c0_3 = arith.constant 0 : index
    %c0_4 = arith.constant 0 : index
    %2 = vector.load %arg2[%c0_2, %c0_3, %c0_4] : memref<1x4x1024xf32, #tpu.memory_space<vmem>>, vector<1x4x1024xf32>
    %3 = vector.shape_cast %2 : vector<1x4x1024xf32> to vector<4x1024xf32>
    %cst = arith.constant dense<0.000000e+00> : vector<4x1024xf32>
    %4 = tpu.matmul %1, %3, %cst {dimension_numbers = #tpu.dot_dimension_numbers<[1], [0], [0], [1], [0, 0, 1, 1], [], []>} : vector<4x4xf32>, vector<4x1024xf32>, vector<4x1024xf32> -> vector<4x1024xf32>
    %c0_5 = arith.constant 0 : index
    %c0_6 = arith.constant 0 : index
    %c0_7 = arith.constant 0 : index
    %5 = vector.load %arg4[%c0_5, %c0_6, %c0_7] : memref<1x4x1xf32, #tpu.memory_space<vmem>>, vector<1x4x1xf32>
    %6 = vector.shape_cast %5 : vector<1x4x1xf32> to vector<4x1xf32>
    %7 = vector.broadcast %6 : vector<4x1xf32> to vector<4x1024xf32>
    %8 = arith.addf %4, %7 : vector<4x1024xf32>
    %c0_8 = arith.constant 0 : index
    %c0_9 = arith.constant 0 : index
    %c0_10 = arith.constant 0 : index
    %9 = vector.load %arg5[%c0_8, %c0_9, %c0_10] : memref<1x4x1024xf32, #tpu.memory_space<vmem>>, vector<1x4x1024xf32>
    %10 = vector.shape_cast %9 : vector<1x4x1024xf32> to vector<4x1024xf32>
    %11 = vector.shape_cast %8 : vector<4x1024xf32> to vector<1x4x1024xf32>
    tpu.vector_store %arg5[%c0_8, %c0_9, %c0_10], %11 {strides = array<i32>} : memref<1x4x1024xf32, #tpu.memory_space<vmem>>, vector<1x4x1024xf32>,
    return
  }
  func.func @transform_0(%arg0: i32, %arg1: i32) -> (i32, i32, i32) {
    %c0_i32 = arith.constant 0 : i32
    %c0_i32_0 = arith.constant 0 : i32
    return %arg0, %c0_i32, %arg1 : i32, i32, i32
  }
  func.func @transform_1(%arg0: i32, %arg1: i32) -> (i32, i32, i32) {
    %c0_i32 = arith.constant 0 : i32
    %c0_i32_0 = arith.constant 0 : i32
    %c0_i32_1 = arith.constant 0 : i32
    return %arg0, %c0_i32, %c0_i32_0 : i32, i32, i32
  }
  func.func @transform_2(%arg0: i32, %arg1: i32) -> (i32, i32, i32) {
    %c0_i32 = arith.constant 0 : i32
    %c0_i32_0 = arith.constant 0 : i32
    %c0_i32_1 = arith.constant 0 : i32
    return %arg0, %c0_i32, %c0_i32_0 : i32, i32, i32
  }
  func.func @transform_3(%arg0: i32, %arg1: i32) -> (i32, i32, i32) {
    %c0_i32 = arith.constant 0 : i32
    %c0_i32_0 = arith.constant 0 : i32
    return %arg0, %c0_i32, %arg1 : i32, i32, i32
  }
}

</mosaic_0001>

<bundles_post_ra>
// kernel: attn_block.2
= control target key start
LH: loop header
LB: loop body
LE: loop exit
PB: predicated region body
PF: predicated region fallthrough
CT: control target
= control target key end

     0   :  { %s872_s12 = smov 0   ;;  %s874_s13 = smov 0   ;;  %s933_s0 = inlined_call_operand.vmem [shape: f32[2,4,1024], index: 0, kind: input, shape index: {}]   ;;  %s934_s1 = inlined_call_operand.vmem [shape: f32[2,1,4,4], index: 1, kind: output, shape index: {0}]   ;;  %s935_s2 = inlined_call_operand.vmem [shape: f32[2,1,4,1], index: 2, kind: output, shape index: {1}]   ;;  %s936_s3 = inlined_call_operand.vmem [shape: f32[2,1,4,1], index: 3, kind: output, shape index: {2}]  }
   0x1   :  { %s876_s14 = smov 0  }
   0x2 LB: > { %s33_s15 = sadd.s32 1, %s845_s13  ;;  %p789_p0 = scmp.ge.s32.totalorder %s849_s14, 1  ;;  %s849_s14 = sphi %s876_s14, %s14_s14   ;;  %s845_s13 = sphi %s874_s13, %s938_s13   ;;  %s841_s12 = sphi %s872_s12, %s937_s12  }
   0x3   : > { %p35_p1 = scmp.ge.s32.totalorder %s33_s15, 2  ;;  %p178_p2 = scmp.lt.s32.totalorder %s849_s14, 3 }
   0x5   : > { %s940_s15 = smov (%p35_p1, %s33_s15), 0  ;;  %p179_p3 = pnand %p789_p0, %p178_p2 }
   0x6   : > { %p225_p4 = scmp.lt.s32.totalorder (!%p179_p3), %s841_s12, 1  ;;  %vm566_vm0 = vcmask (!%p179_p3), 1043456   ;;  %vm262_vm1 = vcmask (!%p179_p3), 3072   ;;  %v851_v46 = vmov (!%p179_p3), 0.0   ;;  %vm260_vm2 = vcmask (!%p179_p3), 27648  }
   0x7   : > { %182 = sbr.rel (%p179_p3) target bundleno = 247 (0xf7), region = 24 }
   0xe   : > { %s942_s12 = smov (!%p225_p4, %s841_s12), 1 }
   0xf   : > { %s797_s16 = sshll.u32 %s942_s12, 5  ;;  %s792_s20 = sshll.u32 %s942_s12, 2 }
  0x10   : > { %s232_s19 = scalar_lea.vmem %s933_s0, %s797_s16  ;;  %s248_s23 = scalar_lea.vmem %s935_s2, %s792_s20 }
  0x11   : > { %v265_v0 = vld [vmem:[%s232_s19] sm:$0xff]  ;;  %v266_v1 = vld [vmem:[%s232_s19 + $0x8] sm:$0xff]  ;;  %v267_v2 = vld [vmem:[%s232_s19 + $0x10] sm:$0xff]  ;;  %263 = vst.msk [vmem:[%s248_s23] sm:$0xf] %vm262_vm1, %v851_v46  ;;  %s241_s26 = scalar_lea.vmem %s934_s1, %s792_s20  ;;  %s255_s29 = scalar_lea.vmem %s936_s3, %s792_s20 }
  0x12   : > { %v274_v3 = vcombine.high %v265_v0, %v265_v0  ;;  %v567_v4 = vsel %vm566_vm0, %v265_v0, 0.0  ;;  %v275_v5 = vcombine.high %v266_v1, %v266_v1  ;;  %v268_v6 = vld [vmem:[%s232_s19 + $0x18] sm:$0xff]  ;;  %v276_v7 = vcombine.high %v267_v2, %v267_v2  ;;  %261 = vst.msk [vmem:[%s241_s26] sm:$0xf] %vm260_vm2, %v851_v46 }
  0x13   : > { %v277_v8 = vcombine.high %v268_v6, %v268_v6  ;;  %v570_v10 = vsel %vm566_vm0, %v266_v1, 0.0  ;;  %v588_v11 = vmul.f32 %v265_v0, %v265_v0  ;;  %v589_v13 = vmul.f32 %v266_v1, %v266_v1  ;;  %264 = vst.msk [vmem:[%s255_s29] sm:$0xf] %vm262_vm1, %v851_v46 }
  0x14   : > { %282 = vmatprep.subr.mxu0 %v274_v3  ;;  %v568_v9 = vsel %vm566_vm0, %v274_v3, 0.0  ;;  %352 = vmatprep.subr.mxu1 %v275_v5  ;;  %v572_v14 = vsel %vm566_vm0, %v275_v5, 0.0  ;;  %v590_v15 = vmul.f32 %v267_v2, %v267_v2  ;;  %v574_v20 = vsel %vm566_vm0, %v267_v2, 0.0 }
  0x15   : > { %v569_v12 = vadd.f32 %v568_v9, %v567_v4  ;;  %283 = vmatpush1.xpose.msra.mxu0 %v265_v0  ;;  %353 = vmatpush1.xpose.msra.mxu1 %v266_v1  ;;  %v596_v16 = vcombine.high %v588_v11, %v588_v11  ;;  %v604_v17 = vsel %vm566_vm0, %v588_v11, 0.0  ;;  %v597_v19 = vcombine.high %v589_v13, %v589_v13 }
  0x16   : > { %346 = vmatprep.mubr.f32.mxu0 %v274_v3  ;;  %416 = vmatprep.mubr.f32.mxu1 %v275_v5  ;;  %v607_v22 = vsel %vm566_vm0, %v589_v13, 0.0  ;;  %v576_v25 = vsel %vm566_vm0, %v276_v7, 0.0  ;;  %v591_v26 = vmul.f32 %v268_v6, %v268_v6  ;;  %v598_v27 = vcombine.high %v590_v15, %v590_v15 }
  0x17   : > { %422 = vmatprep.subr.mxu0 %v276_v7  ;;  %492 = vmatprep.subr.mxu1 %v277_v8  ;;  %v571_v18 = vadd.f32 %v570_v10, %v569_v12  ;;  %v605_v21 = vsel %vm566_vm0, %v596_v16, 0.0  ;;  %v609_v28 = vsel %vm566_vm0, %v597_v19, 0.0  ;;  %v578_v31 = vsel %vm566_vm0, %v268_v6, 0.0 }
  0x18   : > { %347 = vmatmul.mubr.f32.vlgmr.msra.gmra.mrb[0].mxu0 %v265_v0  ;;  %417 = vmatmul.mubr.f32.vlgmr.msra.gmra.mrb[0].mxu1 %v266_v1  ;;  %v606_v24 = vadd.f32 %v605_v21, %v604_v17  ;;  %v611_v32 = vsel %vm566_vm0, %v590_v15, 0.0  ;;  %v580_v35 = vsel %vm566_vm0, %v277_v8, 0.0  ;;  %v599_v36 = vcombine.high %v591_v26, %v591_v26  ;;  %v565_v47 = vld [vmem:[%s248_s23] sm:$0xf] }
  0x19   : > { %423 = vmatpush1.xpose.msra.mxu0 %v267_v2  ;;  %486 = vmatprep.mubr.f32.mxu0 %v276_v7  ;;  %v573_v23 = vadd.f32 %v572_v14, %v571_v18  ;;  %v613_v37 = vsel %vm566_vm0, %v598_v27, 0.0  ;;  %v615_v40 = vsel %vm566_vm0, %v591_v26, 0.0  ;;  %v269_v62 = vld [vmem:[%s241_s26] sm:$0xf] }
  0x1a   : > { %493 = vmatpush1.xpose.msra.mxu1 %v268_v6  ;;  %556 = vmatprep.mubr.f32.mxu1 %v277_v8  ;;  %v608_v30 = vadd.f32 %v607_v22, %v606_v24  ;;  %v617_v43 = vsel %vm566_vm0, %v599_v36, 0.0  ;;  %v587_v50 = vld [vmem:[%s255_s29] sm:$0xf] }
  0x1b   : > { %v575_v29 = vadd.f32 %v574_v20, %v573_v23 }
  0x1c   : > { %487 = vmatmul.mubr.f32.vlgmr.msra.gmra.mrb[2].mxu0 %v267_v2  ;;  %v610_v34 = vadd.f32 %v609_v28, %v608_v30 }
  0x1d   : > { %557 = vmatmul.mubr.f32.vlgmr.msra.gmra.mrb[2].mxu1 %v268_v6  ;;  %v577_v33 = vadd.f32 %v576_v25, %v575_v29 }
  0x1e   : > { %v612_v39 = vadd.f32 %v611_v32, %v610_v34 }
  0x1f   : > { %v579_v38 = vadd.f32 %v578_v31, %v577_v33 }
  0x20   : > { %v614_v42 = vadd.f32 %v613_v37, %v612_v39 }
  0x21   : > { %v581_v41 = vadd.f32 %v580_v35, %v579_v38 }
  0x22   : > { %v616_v44 = vadd.f32 %v615_v40, %v614_v42 }
  0x23   : > { %582 = vadd.xlane.f32.xlu0 %v581_v41 }
  0x24   : > { %v618_v45 = vadd.f32 %v617_v43, %v616_v44 }
  0x27   : > { %619 = vadd.xlane.f32.xlu0 %v618_v45 }
  0xb0   : > { %v583_v48 = vpop.xlane.xlu0 %582 }
  0xb1   : > { %v584_v49 = vadd.f32 %v583_v48, %v565_v47 }
  0xb3   : > { %586 = vst.msk [vmem:[%s248_s23] sm:$0xf] %vm262_vm1, %v584_v49 }
  0xb4   : > { %v620_v51 = vpop.xlane.xlu0 %619 }
  0xb5   : > { %v621_v52 = vadd.f32 %v620_v51, %v587_v50 }
  0xb7   : > { %622 = vst.msk [vmem:[%s255_s29] sm:$0xf] %vm262_vm1, %v621_v52 }
  0xeb   : > { %v348_v53 = vpop.f32.mrb[0].mxu0  ;;  %v418_v54 = vpop.f32.mrb[0].mxu1 }
  0xec   : > { %v350_v55 = vpop.f32.mrb[1].mxu0  ;;  %v419_v56 = vadd.f32 %v418_v54, %v348_v53  ;;  %v420_v57 = vpop.f32.mrb[1].mxu1 }
  0xef   : > { %v488_v58 = vpop.f32.mrb[2].mxu0 }
  0xf0   : > { %v489_v59 = vadd.f32 %v488_v58, %v419_v56  ;;  %v490_v60 = vpop.f32.mrb[3].mxu0  ;;  %v558_v61 = vpop.f32.mrb[2].mxu1 }
  0xf1   : > { %v560_v63 = vpop.f32.mrb[3].mxu1 }
  0xf2   : > { %v559_v0 = vadd.f32 %v558_v61, %v489_v59 }
  0xf4   : > { %v562_v1 = vadd.f32 %v559_v0, %v269_v62 }
  0xf6   : > { %564 = vst.msk [vmem:[%s241_s26] sm:$0xf] %vm260_vm2, %v562_v1 }
  0xf7 PF: > { %s14_s14 = sadd.s32 1, %s849_s14   ;;  %s937_s12 = smov %s845_s13 }
  0xf8   : > { %p11_p5 = scmp.ge.s32.totalorder %s14_s14, 4   ;;  %s938_s13 = smov %s940_s15 }
  0xfa   :  { %13 = sbr.rel (!%p11_p5) target bundleno = 2 (0x2), region = 82 }

// kernel: attn_block.3
= control target key start
LH: loop header
LB: loop body
LE: loop exit
PB: predicated region body
PF: predicated region fallthrough
CT: control target
= control target key end

     0   :  { %s803_s12 = smov 0   ;;  %s805_s13 = smov 0   ;;  %s862_s0 = inlined_call_operand.vmem [shape: f32[2,4,1024], index: 0, kind: input, shape index: {}]   ;;  %s863_s1 = inlined_call_operand.vmem [shape: f32[2,4,4], index: 1, kind: input, shape index: {}]   ;;  %s864_s2 = inlined_call_operand.vmem [shape: f32[2,4,1], index: 2, kind: input, shape index: {}]   ;;  %s865_s3 = inlined_call_operand.vmem [shape: f32[2,4,1024], index: 3, kind: output, shape index: {}]  }
   0x1   :  { %s807_s14 = smov 0  }
   0x2 LB: > { %s25_s15 = sadd.s32 1, %s775_s13  ;;  %p703_p0 = scmp.ge.s32.totalorder %s779_s14, 1  ;;  %s779_s14 = sphi %s807_s14, %s13_s14   ;;  %s775_s13 = sphi %s805_s13, %s867_s13   ;;  %s771_s12 = sphi %s803_s12, %s866_s12  }
   0x3   : > { %p27_p1 = scmp.ge.s32.totalorder %s25_s15, 2  ;;  %p176_p2 = scmp.lt.s32.totalorder %s779_s14, 3 }
   0x5   : > { %s869_s15 = smov (%p27_p1, %s25_s15), 0  ;;  %p177_p3 = pnand %p703_p0, %p176_p2 }
   0x6   : > { %p217_p4 = scmp.lt.s32.totalorder (!%p177_p3), %s771_s12, 1  ;;  %v781_v0 = vmov (!%p177_p3), 0.0   ;;  %v782_v1 = vmov (!%p177_p3), 0   ;;  %vm267_vm0 = vcmask (!%p177_p3), 1043456   ;;  %vm263_vm1 = vcmask (!%p177_p3), 31744  }
   0x7   : > { %180 = sbr.rel (%p177_p3) target bundleno = 244 (0xf4), region = 32  ;;  %348 = vmatprep.mubr.f32.mxu0 (!%p177_p3), %v781_v0  ;;  %419 = vmatprep.mubr.f32.mxu1 (!%p177_p3), %v781_v0 }
   0x8   : > { %752 = vset.pattern.permute.xlu0 (!%p177_p3), %v782_v1 }
   0xe   : > { %s871_s12 = smov (!%p217_p4, %s771_s12), 1 }
   0xf   : > { %s724_s16 = sshll.u32 %s871_s12, 5  ;;  %s706_s17 = sshll.u32 %s871_s12, 2 }
  0x10   : > { %s224_s20 = scalar_lea.vmem %s862_s0, %s724_s16  ;;  %s229_s23 = scalar_lea.vmem %s863_s1, %s706_s17 }
  0x11   : > { %v245_v2 = vld [vmem:[%s224_s20] sm:$0xff]  ;;  %v246_v3 = vld [vmem:[%s224_s20 + $0x8] sm:$0xff]  ;;  %s233_s26 = scalar_lea.vmem %s864_s2, %s706_s17  ;;  %v247_v6 = vld [vmem:[%s224_s20 + $0x10] sm:$0xff]  ;;  %s242_s29 = scalar_lea.vmem %s865_s3, %s724_s16 }
  0x12   : > { %v259_v4 = vcombine.high %v245_v2, %v245_v2  ;;  %v260_v5 = vcombine.high %v246_v3, %v246_v3  ;;  %v248_v7 = vld [vmem:[%s224_s20 + $0x18] sm:$0xff]  ;;  %v249_v8 = vld [vmem:[%s233_s26] sm:$0xf]  ;;  %v261_v10 = vcombine.high %v247_v6, %v247_v6 }
  0x13   : > { %v244_v9 = vld [vmem:[%s229_s23] sm:$0xf]  ;;  %v262_v11 = vcombine.high %v248_v7, %v248_v7  ;;  %252 = vperm.xlu0 %752, %v249_v8  }
  0x14   : > { %710 = vmatprep.subr.msk.mxu0 %vm267_vm0, %v259_v4  ;;  %713 = vmatprep.subr.msk.mxu1 %vm267_vm0, %v260_v5 }
  0x15   : > { %711 = vmatpush1.msk.msra.mxu0 %vm267_vm0, %v245_v2  ;;  %714 = vmatpush1.msk.msra.mxu1 %vm267_vm0, %v246_v3 }
  0x16   : > { %712 = vmatmul.mubr.msk.f32.vlgmr.msra.gmra.mrb[0].mxu0 %vm263_vm1, %v244_v9  ;;  %715 = vmatmul.mubr.msk.f32.vlgmr.msra.gmra.mrb[0].mxu1 %vm263_vm1, %v244_v9 }
  0x17   : > { %716 = vmatprep.subr.msk.mxu0 %vm267_vm0, %v261_v10  ;;  %719 = vmatprep.subr.msk.mxu1 %vm267_vm0, %v262_v11 }
  0x18   : > { %717 = vmatpush1.msk.msra.mxu0 %vm267_vm0, %v247_v6  ;;  %720 = vmatpush1.msk.msra.mxu1 %vm267_vm0, %v248_v7 }
  0x19   : > { %490 = vmatprep.mubr.f32.mxu0 %v781_v0  ;;  %561 = vmatprep.mubr.f32.mxu1 %v781_v0 }
  0x1a   : > { %718 = vmatmul.mubr.msk.f32.vlgmr.msra.gmra.mrb[2].mxu0 %vm263_vm1, %v244_v9  ;;  %721 = vmatmul.mubr.msk.f32.vlgmr.msra.gmra.mrb[2].mxu1 %vm263_vm1, %v244_v9 }
  0x92   : > { %v253_v12 = vpop.permute.xlu0 %252 }
  0xe9   : > { %v350_v13 = vpop.f32.mrb[0].mxu0  ;;  %v421_v14 = vpop.f32.mrb[0].mxu1 }
  0xea   : > { %v351_v15 = vadd.f32 %v350_v13, %v253_v12  ;;  %v352_v16 = vpop.f32.mrb[1].mxu0  ;;  %v422_v17 = vadd.f32 %v421_v14, %v253_v12  ;;  %v423_v18 = vpop.f32.mrb[1].mxu1 }
  0xeb   : > { %v353_v19 = vadd.f32 %v352_v16, %v253_v12  ;;  %v424_v20 = vadd.f32 %v423_v18, %v253_v12 }
  0xed   : > { %v576_v21 = vcombine.low %v351_v15, %v353_v19  ;;  %v577_v22 = vcombine.low %v422_v17, %v424_v20  ;;  %v492_v23 = vpop.f32.mrb[2].mxu0  ;;  %v563_v24 = vpop.f32.mrb[2].mxu1 }
  0xee   : > { %v493_v25 = vadd.f32 %v492_v23, %v253_v12  ;;  %v564_v26 = vadd.f32 %v563_v24, %v253_v12  ;;  %v494_v27 = vpop.f32.mrb[3].mxu0  ;;  %v565_v28 = vpop.f32.mrb[3].mxu1 }
  0xef   : > { %584 = vst [vmem:[%s242_s29] sm:$0xff] %v576_v21  ;;  %585 = vst [vmem:[%s242_s29 + $0x8] sm:$0xff] %v577_v22  ;;  %v495_v29 = vadd.f32 %v494_v27, %v253_v12  ;;  %v566_v30 = vadd.f32 %v565_v28, %v253_v12 }
  0xf1   : > { %v578_v31 = vcombine.low %v493_v25, %v495_v29  ;;  %v579_v32 = vcombine.low %v564_v26, %v566_v30 }
  0xf3   : > { %586 = vst [vmem:[%s242_s29 + $0x10] sm:$0xff] %v578_v31  ;;  %587 = vst [vmem:[%s242_s29 + $0x18] sm:$0xff] %v579_v32 }
  0xf4 PF: > { %s13_s14 = sadd.s32 1, %s779_s14   ;;  %s866_s12 = smov %s775_s13 }
  0xf5   : > { %p10_p5 = scmp.ge.s32.totalorder %s13_s14, 4   ;;  %s867_s13 = smov %s869_s15 }
  0xf7   :  { %12 = sbr.rel (!%p10_p5) target bundleno = 2 (0x2), region = 68 }

</bundles_post_ra>
